<compile_context>
chip_gen: v5e
topology: v5e:2x2
jax: 0.10.0
libtpu: 0.0.40
codegen_flags: <defaults>
</compile_context>

<pallas_src>
import functools

import numpy as np
import jax
import jax.numpy as jnp
from jax.experimental import pallas as pl
from jax.experimental.pallas import tpu as pltpu


POOL_SIZES = (1, 2, 3, 6)
KK = sum(k * k for k in POOL_SIZES)      # 50 pooled "pixels" across all branches
KK_PAD = 128                             # pad the branch-column axis to one lane tile
_VMEM_LIMIT = 48 * 1024 * 1024           # above default scoped limits, safe on all gens


# ----------------------------------------------------------------------------
# Host-side linear-operator builders (deterministic numpy, cached)
# ----------------------------------------------------------------------------
def adaptive_pool_matrix(out_size: int, in_size: int) -> np.ndarray:
    """(out_size, in_size) matrix implementing 1-D adaptive average pooling."""
    m = np.zeros((out_size, in_size), np.float32)
    for i in range(out_size):
        start = (i * in_size) // out_size
        end = -(-((i + 1) * in_size) // out_size)  # ceil division
        m[i, start:end] = 1.0 / (end - start)
    return m


def upsample_matrix(out_size: int, in_size: int) -> np.ndarray:
    """(out_size, in_size) matrix for 1-D bilinear interp, align_corners=True."""
    m = np.zeros((out_size, in_size), np.float32)
    if in_size == 1:
        m[:, 0] = 1.0
        return m
    for o in range(out_size):
        src = o * (in_size - 1) / (out_size - 1) if out_size > 1 else 0.0
        i0 = min(int(np.floor(src)), in_size - 2)
        frac = src - i0
        m[o, i0] += 1.0 - frac
        m[o, i0 + 1] += frac
    return m


def spatial_pool_operator(k: int, H: int, W: int) -> np.ndarray:
    """(H*W, k*k): x_flat @ P == adaptive_avg_pool2d(x, k) flattened."""
    ph = adaptive_pool_matrix(k, H)  # (k, H)
    pw = adaptive_pool_matrix(k, W)  # (k, W)
    return np.einsum("ih,jw->hwij", ph, pw).reshape(H * W, k * k).astype(np.float32)


def spatial_upsample_operator(k: int, H: int, W: int) -> np.ndarray:
    """(k*k, H*W): y_flat @ U == bilinear(align_corners=True) upsample to (H, W)."""
    uh = upsample_matrix(H, k)  # (H, k)
    uw = upsample_matrix(W, k)  # (W, k)
    return np.einsum("hi,wj->ijhw", uh, uw).reshape(k * k, H * W).astype(np.float32)


@functools.lru_cache(maxsize=None)
def _pyramid_operators(H: int, W: int):
    """Stacked pooling (HW, KK_PAD) and upsample (KK_PAD, HW) operators."""
    HW = H * W
    P = np.zeros((HW, KK_PAD), np.float32)
    U = np.zeros((KK_PAD, HW), np.float32)
    off = 0
    for k in POOL_SIZES:
        kk = k * k
        P[:, off:off + kk] = spatial_pool_operator(k, H, W)
        U[off:off + kk, :] = spatial_upsample_operator(k, H, W)
        off += kk
    return P, U


@functools.lru_cache(maxsize=None)
def _branch_mask(OC: int) -> np.ndarray:
    """(4*OC, KK_PAD) block-diagonal branch mask (zeros cross-branch terms)."""
    m = np.zeros((4 * OC, KK_PAD), np.float32)
    off = 0
    for i, k in enumerate(POOL_SIZES):
        kk = k * k
        m[i * OC:(i + 1) * OC, off:off + kk] = 1.0
        off += kk
    return m


def _pick_hw_tile(HW: int) -> int:
    """Largest 128-multiple tile dividing HW (lane-dense stores); else full HW."""
    for t in (512, 256, 128):
        if HW % t == 0:
            return t
    # Fallback: full-extent block (always legal). For production shapes where
    # HW is not a multiple of 128 (e.g. 3600), padding HW to the next multiple
    # of 128 and slicing afterwards keeps stores unmasked and lane-dense.
    return HW


# ----------------------------------------------------------------------------
# Kernel 1: fused adaptive-avg-pool (all 4 sizes) + 1x1 conv + BN(eval) + ReLU
#   grid = (N, num_hw_tiles); HW axis is a reduction ('arbitrary', innermost)
# ----------------------------------------------------------------------------
def _pool_conv_bn_kernel(x_ref, p_ref, w_ref, shift_ref, mask_ref, y_ref,
                         pooled_acc):
    s = pl.program_id(1)

    @pl.when(s == 0)
    def _init():
        pooled_acc[...] = jnp.zeros_like(pooled_acc)

    # pooled += x_tile (C, hw_tile) @ P_tile (hw_tile, KK_PAD)
    pooled_acc[...] += jnp.dot(x_ref[0], p_ref[...],
                               preferred_element_type=jnp.float32)

    @pl.when(s == pl.num_programs(1) - 1)
    def _finalize():
        # BN scale is already folded into w_ref; add shift, ReLU, mask
        y = jnp.dot(w_ref[...], pooled_acc[...],
                    preferred_element_type=jnp.float32)        # (4*OC, KK_PAD)
        y = jnp.maximum(y + shift_ref[...], 0.0) * mask_ref[...]
        y_ref[0] = y.astype(y_ref.dtype)


# ----------------------------------------------------------------------------
# Kernel 2: bilinear upsample of all 4 branches (one matmul) + identity branch
#   written directly into the concatenated output slab.
#   grid = (N, num_hw_tiles); both axes 'parallel'
# ----------------------------------------------------------------------------
def _upsample_concat_kernel(x_ref, y_ref, u_ref, out_ref):
    C = x_ref.shape[1]
    out_ref[0, :C, :] = x_ref[0].astype(out_ref.dtype)          # identity branch
    feat = jnp.dot(y_ref[0], u_ref[...],
                   preferred_element_type=jnp.float32)           # (4*OC, hw_tile)
    out_ref[0, C:, :] = feat.astype(out_ref.dtype)


# ----------------------------------------------------------------------------
# PyramidPooling forward
# ----------------------------------------------------------------------------
def pyramid_pooling(x, params, *, compute_dtype=None):
    """x: (N, C, H, W). params: list of 4 branch dicts (conv_w, gamma, beta,
    mean, var).  compute_dtype=jnp.bfloat16 halves HBM traffic for x/W/P/U
    (accumulation stays f32; identity branch stays exact)."""
    N, C, H, W = x.shape
    OC = C // 4
    oc4 = 4 * OC
    HW = H * W
    cdtype = jnp.dtype(compute_dtype) if compute_dtype is not None else x.dtype

    P_np, U_np = _pyramid_operators(H, W)
    mask = jnp.asarray(_branch_mask(OC))                  # (4*OC, KK_PAD) f32

    # Fold BN(eval) scale into the 1x1 conv weights (once per call, host-side).
    eps = 1e-5
    w_blocks, shift_blocks = [], []
    for p in params:
        scale = p["gamma"] / jnp.sqrt(p["var"] + eps)
        w_blocks.append(p["conv_w"] * scale[:, None])
        shift_blocks.append((p["beta"] - p["mean"] * scale)[:, None])
    w_stack = jnp.concatenate(w_blocks, axis=0).astype(cdtype)           # (4*OC, C)
    shift = jnp.concatenate(shift_blocks, axis=0).astype(jnp.float32)    # (4*OC, 1)

    x_flat = x.reshape(N, C, HW)
    x_c = x_flat.astype(cdtype)
    p_all = jnp.asarray(P_np).astype(cdtype)              # (HW, KK_PAD)
    u_all = jnp.asarray(U_np).astype(cdtype)              # (KK_PAD, HW)

    hw_tile = _pick_hw_tile(HW)
    num_hw = HW // hw_tile

    # Phase 1: pooled/conv/BN/ReLU -> Y (N, 4*OC, KK_PAD), tiny intermediate.
    y = pl.pallas_call(
        _pool_conv_bn_kernel,
        out_shape=jax.ShapeDtypeStruct((N, oc4, KK_PAD), jnp.float32),
        grid=(N, num_hw),
        in_specs=[
            pl.BlockSpec((1, C, hw_tile), lambda n, s: (n, 0, s)),   # x
            pl.BlockSpec((hw_tile, KK_PAD), lambda n, s: (s, 0)),    # P_all
            pl.BlockSpec((oc4, C), lambda n, s: (0, 0)),             # W (BN-scaled)
            pl.BlockSpec((oc4, 1), lambda n, s: (0, 0)),             # BN shift
            pl.BlockSpec((oc4, KK_PAD), lambda n, s: (0, 0)),        # branch mask
        ],
        out_specs=pl.BlockSpec((1, oc4, KK_PAD), lambda n, s: (n, 0, 0)),
        scratch_shapes=[pltpu.VMEM((C, KK_PAD), jnp.float32)],
        compiler_params=pltpu.CompilerParams(
            dimension_semantics=("parallel", "arbitrary"),
            vmem_limit_bytes=_VMEM_LIMIT),
    )(x_c, p_all, w_stack, shift, mask)

    # Phase 2: upsample all branches + write identity branch directly into the
    # concatenated output (no jnp.concatenate round-trip through HBM).
    out_flat = pl.pallas_call(
        _upsample_concat_kernel,
        out_shape=jax.ShapeDtypeStruct((N, C + oc4, HW), x.dtype),
        grid=(N, num_hw),
        in_specs=[
            pl.BlockSpec((1, C, hw_tile), lambda n, s: (n, 0, s)),    # x (identity)
            pl.BlockSpec((1, oc4, KK_PAD), lambda n, s: (n, 0, 0)),   # Y
            pl.BlockSpec((KK_PAD, hw_tile), lambda n, s: (0, s)),     # U_all
        ],
        out_specs=pl.BlockSpec((1, C + oc4, hw_tile), lambda n, s: (n, 0, s)),
        compiler_params=pltpu.CompilerParams(
            dimension_semantics=("parallel", "parallel"),
            vmem_limit_bytes=_VMEM_LIMIT),
    )(x_flat, y, u_all)

    return out_flat.reshape(N, C + oc4, H, W)


# ----------------------------------------------------------------------------
# Pure-JAX reference (independent per-branch composition) for correctness
# ----------------------------------------------------------------------------
def pyramid_pooling_ref(x, params):
    N, C, H, W = x.shape
    x_flat = x.reshape(N, C, H * W)
    feats = [x]
    for k, p in zip(POOL_SIZES, params):
        P = jnp.asarray(spatial_pool_operator(k, H, W))
        U = jnp.asarray(spatial_upsample_operator(k, H, W))
        eps = 1e-5
        scale = p["gamma"] / jnp.sqrt(p["var"] + eps)
        shift = p["beta"] - p["mean"] * scale
        pooled = jnp.einsum("ncs,sp->ncp", x_flat, P)
        y = jnp.einsum("oc,ncp->nop", p["conv_w"], pooled)
        y = jnp.maximum(y * scale[None, :, None] + shift[None, :, None], 0.0)
        feat = jnp.einsum("nop,ps->nos", y, U)
        feats.append(feat.reshape(N, -1, H, W))
    return jnp.concatenate(feats, axis=1)


# ----------------------------------------------------------------------------
# Deterministic parameter construction + demo
# ----------------------------------------------------------------------------
def make_params(key, in_channels):
    out_channels = in_channels // 4
    params = []
    for b in range(4):
        kw, kg, kb = jax.random.split(jax.random.fold_in(key, b), 3)
        params.append(dict(
            conv_w=0.1 * jax.random.normal(kw, (out_channels, in_channels),
                                           jnp.float32),
            gamma=1.0 + 0.1 * jax.random.normal(kg, (out_channels,), jnp.float32),
            beta=0.1 * jax.random.normal(kb, (out_channels,), jnp.float32),
            mean=jnp.zeros((out_channels,), jnp.float32),   # BN running stats
            var=jnp.ones((out_channels,), jnp.float32),
        ))
    return params


if __name__ == "__main__":
    key = jax.random.PRNGKey(0)

    # (N, C, H, W): cover single-tile, multi-tile-reduction and full-HW cases.
    test_cases = [
        (2, 8, 16, 16),   # HW=256  -> hw_tile=256, 1 reduction step
        (2, 4, 32, 32),   # HW=1024 -> hw_tile=512, 2 reduction steps
        (1, 4, 24, 24),   # HW=576  -> full-HW fallback tile
    ]
    for idx, (N, C, H, W) in enumerate(test_cases):
        kx, kp = jax.random.split(jax.random.fold_in(key, idx))
        x = jax.random.normal(kx, (N, C, H, W), jnp.float32)
        params = make_params(kp, C)

        out = jax.block_until_ready(pyramid_pooling(x, params))
        ref = jax.block_until_ready(pyramid_pooling_ref(x, params))
        assert out.shape == (N, C + 4 * (C // 4), H, W), out.shape
        np.testing.assert_allclose(np.asarray(out), np.asarray(ref),
                                   rtol=1e-4, atol=1e-5)

    # bf16 operand path (mem-bound win on real shapes); f32 accumulation,
    # identity branch stays exact f32 -> loose tolerance on feature channels.
    N, C, H, W = 2, 8, 16, 16
    kx, kp = jax.random.split(jax.random.fold_in(key, 100))
    x = jax.random.normal(kx, (N, C, H, W), jnp.float32)
    params = make_params(kp, C)
    out_bf16 = jax.block_until_ready(
        pyramid_pooling(x, params, compute_dtype=jnp.bfloat16))
    ref = jax.block_until_ready(pyramid_pooling_ref(x, params))
    np.testing.assert_allclose(np.asarray(out_bf16), np.asarray(ref),
                               rtol=1e-1, atol=1e-1)

    print("KERNEL_OK")
</pallas_src>

<mosaic_0001>
module attributes {stable_mosaic.version = 11 : i64} {
  func.func @_pool_conv_bn_kernel(%arg0: i32, %arg1: i32, %arg2: memref<1x8x256xf32, #tpu.memory_space<vmem>>, %arg3: memref<256x128xf32, #tpu.memory_space<vmem>>, %arg4: memref<8x8xf32, #tpu.memory_space<vmem>>, %arg5: memref<8x1xf32, #tpu.memory_space<vmem>>, %arg6: memref<8x128xf32, #tpu.memory_space<vmem>>, %arg7: memref<1x8x128xf32, #tpu.memory_space<vmem>>, %arg8: memref<8x128xf32, #tpu.memory_space<vmem>>) attributes {dimension_semantics = [#tpu.dimension_semantics<parallel>, #tpu.dimension_semantics<arbitrary>], iteration_bounds = array<i64: 2, 1>, scalar_prefetch = 0 : i64, scratch_operands = 1 : i64, tpu.core_type = #tpu.core_type<tc>, window_params = [{transform_indices = @transform_0, window_bounds = array<i64: 1, 8, 256>}, {transform_indices = @transform_1, window_bounds = array<i64: 256, 128>}, {pipeline_mode = #tpu.pipeline_mode<synchronous>, transform_indices = @transform_2, window_bounds = array<i64: 8, 8>}, {pipeline_mode = #tpu.pipeline_mode<synchronous>, transform_indices = @transform_3, window_bounds = array<i64: 8, 1>}, {pipeline_mode = #tpu.pipeline_mode<synchronous>, transform_indices = @transform_4, window_bounds = array<i64: 8, 128>}, {transform_indices = @transform_5, window_bounds = array<i64: 1, 8, 128>}]} {
    %c0_i32 = arith.constant 0 : i32
    %0 = arith.cmpi eq, %arg1, %c0_i32 : i32
    %1 = arith.extui %0 : i1 to i32
    %c0_i32_0 = arith.constant 0 : i32
    %2 = arith.cmpi ne, %1, %c0_i32_0 : i32
    scf.if %2 {
      %cst_11 = arith.constant 0.000000e+00 : f32
      %13 = vector.broadcast %cst_11 : f32 to vector<8x128xf32>
      %c0_12 = arith.constant 0 : index
      %c0_13 = arith.constant 0 : index
      %14 = vector.load %arg8[%c0_12, %c0_13] : memref<8x128xf32, #tpu.memory_space<vmem>>, vector<8x128xf32>
      tpu.vector_store %arg8[%c0_12, %c0_13], %13 {strides = array<i32>} : memref<8x128xf32, #tpu.memory_space<vmem>>, vector<8x128xf32>,
    } else {
    }
    %c0 = arith.constant 0 : index
    %c0_1 = arith.constant 0 : index
    %3 = vector.load %arg8[%c0, %c0_1] : memref<8x128xf32, #tpu.memory_space<vmem>>, vector<8x128xf32>
    %c0_2 = arith.constant 0 : index
    %c0_3 = arith.constant 0 : index
    %c0_4 = arith.constant 0 : index
    %4 = vector.load %arg2[%c0_2, %c0_3, %c0_4] : memref<1x8x256xf32, #tpu.memory_space<vmem>>, vector<1x8x256xf32>
    %5 = vector.shape_cast %4 : vector<1x8x256xf32> to vector<8x256xf32>
    %c0_5 = arith.constant 0 : index
    %c0_6 = arith.constant 0 : index
    %6 = vector.load %arg3[%c0_5, %c0_6] : memref<256x128xf32, #tpu.memory_space<vmem>>, vector<256x128xf32>
    %cst = arith.constant dense<0.000000e+00> : vector<8x128xf32>
    %7 = tpu.matmul %5, %6, %cst {dimension_numbers = #tpu.dot_dimension_numbers<[1], [0], [0], [1], [0, 0, 1, 1], [], []>} : vector<8x256xf32>, vector<256x128xf32>, vector<8x128xf32> -> vector<8x128xf32>
    %8 = arith.addf %3, %7 : vector<8x128xf32>
    %c0_7 = arith.constant 0 : index
    %c0_8 = arith.constant 0 : index
    %9 = vector.load %arg8[%c0_7, %c0_8] : memref<8x128xf32, #tpu.memory_space<vmem>>, vector<8x128xf32>
    tpu.vector_store %arg8[%c0_7, %c0_8], %8 {strides = array<i32>} : memref<8x128xf32, #tpu.memory_space<vmem>>, vector<8x128xf32>,
    %c0_i32_9 = arith.constant 0 : i32
    %10 = arith.cmpi eq, %arg1, %c0_i32_9 : i32
    %11 = arith.extui %10 : i1 to i32
    %c0_i32_10 = arith.constant 0 : i32
    %12 = arith.cmpi ne, %11, %c0_i32_10 : i32
    scf.if %12 {
      %c0_11 = arith.constant 0 : index
      %c0_12 = arith.constant 0 : index
      %13 = vector.load %arg4[%c0_11, %c0_12] : memref<8x8xf32, #tpu.memory_space<vmem>>, vector<8x8xf32>
      %c0_13 = arith.constant 0 : index
      %c0_14 = arith.constant 0 : index
      %14 = vector.load %arg8[%c0_13, %c0_14] : memref<8x128xf32, #tpu.memory_space<vmem>>, vector<8x128xf32>
      %cst_15 = arith.constant dense<0.000000e+00> : vector<8x128xf32>
      %15 = tpu.matmul %13, %14, %cst_15 {dimension_numbers = #tpu.dot_dimension_numbers<[1], [0], [0], [1], [0, 0, 1, 1], [], []>} : vector<8x8xf32>, vector<8x128xf32>, vector<8x128xf32> -> vector<8x128xf32>
      %c0_16 = arith.constant 0 : index
      %c0_17 = arith.constant 0 : index
      %16 = vector.load %arg5[%c0_16, %c0_17] : memref<8x1xf32, #tpu.memory_space<vmem>>, vector<8x1xf32>
      %17 = vector.broadcast %16 : vector<8x1xf32> to vector<8x128xf32>
      %18 = arith.addf %15, %17 : vector<8x128xf32>
      %cst_18 = arith.constant 0.000000e+00 : f32
      %19 = vector.broadcast %cst_18 : f32 to vector<8x128xf32>
      %20 = arith.maximumf %18, %19 : vector<8x128xf32>
      %c0_19 = arith.constant 0 : index
      %c0_20 = arith.constant 0 : index
      %21 = vector.load %arg6[%c0_19, %c0_20] : memref<8x128xf32, #tpu.memory_space<vmem>>, vector<8x128xf32>
      %22 = arith.mulf %20, %21 : vector<8x128xf32>
      %c0_21 = arith.constant 0 : index
      %c0_22 = arith.constant 0 : index
      %c0_23 = arith.constant 0 : index
      %23 = vector.load %arg7[%c0_21, %c0_22, %c0_23] : memref<1x8x128xf32, #tpu.memory_space<vmem>>, vector<1x8x128xf32>
      %24 = vector.shape_cast %23 : vector<1x8x128xf32> to vector<8x128xf32>
      %25 = vector.shape_cast %22 : vector<8x128xf32> to vector<1x8x128xf32>
      tpu.vector_store %arg7[%c0_21, %c0_22, %c0_23], %25 {strides = array<i32>} : memref<1x8x128xf32, #tpu.memory_space<vmem>>, vector<1x8x128xf32>,
    } else {
    }
    return
  }
  func.func @transform_0(%arg0: i32, %arg1: i32) -> (i32, i32, i32) {
    %c0_i32 = arith.constant 0 : i32
    %c0_i32_0 = arith.constant 0 : i32
    return %arg0, %c0_i32, %arg1 : i32, i32, i32
  }
  func.func @transform_1(%arg0: i32, %arg1: i32) -> (i32, i32) {
    %c0_i32 = arith.constant 0 : i32
    %c0_i32_0 = arith.constant 0 : i32
    return %arg1, %c0_i32 : i32, i32
  }
  func.func @transform_2(%arg0: i32, %arg1: i32) -> (i32, i32) {
    %c0_i32 = arith.constant 0 : i32
    %c0_i32_0 = arith.constant 0 : i32
    %c0_i32_1 = arith.constant 0 : i32
    return %c0_i32, %c0_i32_0 : i32, i32
  }
  func.func @transform_3(%arg0: i32, %arg1: i32) -> (i32, i32) {
    %c0_i32 = arith.constant 0 : i32
    %c0_i32_0 = arith.constant 0 : i32
    %c0_i32_1 = arith.constant 0 : i32
    return %c0_i32, %c0_i32_0 : i32, i32
  }
  func.func @transform_4(%arg0: i32, %arg1: i32) -> (i32, i32) {
    %c0_i32 = arith.constant 0 : i32
    %c0_i32_0 = arith.constant 0 : i32
    %c0_i32_1 = arith.constant 0 : i32
    return %c0_i32, %c0_i32_0 : i32, i32
  }
  func.func @transform_5(%arg0: i32, %arg1: i32) -> (i32, i32, i32) {
    %c0_i32 = arith.constant 0 : i32
    %c0_i32_0 = arith.constant 0 : i32
    %c0_i32_1 = arith.constant 0 : i32
    return %arg0, %c0_i32, %c0_i32_0 : i32, i32, i32
  }
}

</mosaic_0001>

<bundles_post_ra>
// kernel: tpu_custom_call.1
= control target key start
LH: loop header
LB: loop body
LE: loop exit
PB: predicated region body
PF: predicated region fallthrough
CT: control target
= control target key end

     0   :  { %10 = vsyncpa [#allocation4], 0  ;;  %s1014_s0 = inlined_call_operand.hbm [shape: f32[2,8,256], index: 0, kind: input, shape index: {}]   ;;  %s1015_s1 = inlined_call_operand.hbm [shape: f32[256,128], index: 1, kind: input, shape index: {}]   ;;  %s1016_s2 = inlined_call_operand.vmem [shape: f32[8,8], index: 2, kind: input, shape index: {}]   ;;  %s1017_s3 = inlined_call_operand.vmem [shape: f32[8,1], index: 3, kind: input, shape index: {}]   ;;  %s1018_s4 = inlined_call_operand.hbm [shape: f32[8,128], index: 4, kind: input, shape index: {}]   ;;  %s1019_s5 = inlined_call_operand.hbm [shape: f32[2,8,128], index: 5, kind: output, shape index: {}]  }
   0x1   :  { %12 = vsyncpa [#allocation4 + $0x1], 0 }
   0x2   :  { %13 = vsyncpa [#allocation7], 0 }
   0x3   :  { %14 = vsyncpa [#allocation5], 0 }
   0x4   :  { %16 = vsyncpa [#allocation5 + $0x1], 0  ;;  %s859_s18 = smov 0   ;;  %s861_s19 = smov 0  }
   0x5   :  { %s863_s20 = smov 0   ;;  %s865_s21 = smov 0  }
   0x6   :  { %s867_s22 = smov 0   ;;  %s869_s23 = smov 0  }
   0x7 LB: > { %s539_s24 = sadd.s32 4294967295, %s822_s23   ;;  %p541_p0 = scmp.ge.s32.totalorder %s822_s23, 1  ;;  %s822_s23 = sphi %s869_s23, %s22_s23   ;;  %s818_s22 = sphi %s867_s22, %s1029_s22   ;;  %s814_s21 = sphi %s865_s21, %s1028_s21   ;;  %s810_s20 = sphi %s863_s20, %s1027_s20   ;;  %s806_s19 = sphi %s861_s19, %s1026_s19   ;;  %s802_s18 = sphi %s859_s18, %s1025_s18  }
   0x8   : > { %p893_p1 = scmp.eq.s32.totalorder %s539_s24, 0  ;;  %p182_p2 = scmp.lt.s32.totalorder %s822_s23, 3 }
   0x9   : > { %s196_s28 = sshll.u32 %s1015_s1, 4  ;;  %s824_s30 = smov [#allocation6]   ;;  %s197_s28 = int_to_ptr.hbm [resolvable:$true] %s196_s28 }
   0xa   : > { %p901_p3 = pnand %p541_p0, %p182_p2  ;;  %s198_s6 = sshll.u32 %s824_s30, 4  ;;  %s199_s6 = int_to_ptr.vmem [resolvable:$true] %s198_s6 }
   0xb   : > { %p544_p6 = scmp.ge.s32.totalorder %s822_s23, 2  ;;  %s217_s9 = sshll.u32 %s1018_s4, 4  ;;  %s218_s9 = int_to_ptr.hbm [resolvable:$true] %s217_s9 }
   0xc   : > { %p571_p4 = pneg %p901_p3  ;;  %s825_s10 = smov 128  }
   0xd   : > { %s826_s11 = smov 8   ;;  %s827_s12 = smov [#allocation8]  }
   0xe   : > { %p572_p5 = pnand %p571_p4, %p893_p1  ;;  %s219_s13 = sshll.u32 %s827_s12, 4  ;;  %s220_s13 = int_to_ptr.vmem [resolvable:$true] %s219_s13 }
   0xf   : > { %s34_s14 = sadd.s32 1, %s818_s22  ;;  %s540_s15 = sadd.s32 4294967294, %s822_s23  }
  0x10   : > { %574 = dma.hbm_to_vmem [thread:$0]  (!%p572_p5), %s197_s28, 4096, %s199_s6, [#allocation7], %s825_s10, %s825_s10, %s826_s11  }
  0x11   : > { %577 = dma.hbm_to_vmem [thread:$0]  (!%p572_p5), %s218_s9, 128, %s220_s13, [#allocation7]  }
  0x12   : > { %p36_p7 = scmp.ge.s32.totalorder %s34_s14, 2  ;;  %s43_s16 = sadd.s32 1, %s810_s20 }
  0x13   : > { %p50_p8 = scmp.ne.s32.totalorder %s810_s20, %s806_s19  ;;  %p51_p9 = scmp.eq.s32.totalorder %s822_s23, 0 }
  0x14   : > { %s1031_s14 = smov (%p36_p7, %s34_s14), 0  ;;  %p56_p10 = scmp.ne.s32.totalorder %s806_s19, %s802_s18 }
  0x15   : > { %s38_s17 = ssub.s32 %s818_s22, %s1031_s14  ;;  %p169_p11 = scmp.eq.s32.totalorder %s539_s24, 1 }
  0x16   : > { %p41_p12 = scmp.eq.s32.totalorder %s38_s17, 0  ;;  %p929_p13 = por %p893_p1, %p56_p10 }
  0x17   : > { %p933_p0 = por %p169_p11, %p50_p8  ;;  %p175_p2 = scmp.eq.s32.totalorder %s540_s15, 1 }
  0x18   : > { %s938_s28 = scalar_select %p41_p12, %s810_s20, %s43_s16  }
  0x19   : > { %p52_p4 = por %p51_p9, %p50_p8  ;;  %p940_p5 = por %p175_p2, %p56_p10 }
  0x1a   : > { %s230_s6 = sand.u32 1, %s810_s20   ;;  %s558_s24 = sshll.u32 %s818_s22, 4 }
  0x1b   : > { %p588_p7 = scmp.lt.s32.totalorder %s822_s23, 2  ;;  %s545_s7 = sshll.u32 %s230_s6, 4 }
  0x1c   : > { %s241_s10 = scalar_lea.hbm %s1014_s0, %s558_s24  ;;  %s234_s12 = scalar_lea.vmem [#allocation3], %s545_s7 }
  0x1d   : > { %s243_s11 = sshll.u32 %s241_s10, 4  ;;  %s245_s13 = sshll.u32 %s234_s12, 4  ;;  %s244_s11 = int_to_ptr.hbm [resolvable:$true] %s243_s11  ;;  %s246_s13 = int_to_ptr.vmem [resolvable:$true] %s245_s13 }
  0x1e   : > { %p579_p11 = pnand %p588_p7, %p52_p4  ;;  %s231_s15 = scalar_lea.sflag [#allocation4], %s230_s6 }
  0x1f   : > { %254 = sbr.rel (%p901_p3) target bundleno = 342 (0x156), region = 40  ;;  %s953_s16 = sand.u32 (!%p901_p3), 1, %s806_s19  }
  0x20   : > { %581 = dma.hbm_to_vmem [thread:$0]  (!%p579_p11), %s244_s11, 256, %s246_s13, %s231_s15  }
  0x21   : > { %s549_s17 = sshll.u32 (!%p901_p3), %s953_s16, 4  ;;  %s257_s8 = scalar_lea.sflag (!%p901_p3), [#allocation4], %s953_s16 }
  0x22   : > { %s957_s24 = scalar_lea.vmem (!%p901_p3), [#allocation3], %s549_s17 }
  0x24   : > { %789 = dma.done.wait (%p929_p13), %s257_s8, 256  }
  0x25   : > { %791 = vsyncadd (%p929_p13), %s257_s8, 4294967040 }
  0x26   : > { %793 = dma.done.wait (%p893_p1), [#allocation7], 4224  }
  0x27   : > { %795 = vsyncadd (%p893_p1), [#allocation7], 4294963072  ;;  %v323_v0 = vld [vmem:[#allocation6 + $0x78] sm:$0xff]  ;;  %v322_v2 = vld [vmem:[#allocation6 + $0x70] sm:$0xff]  ;;  %v828_v35 = vmov 0   ;;  %vm393_vm0 = vcmask 64512  }
  0x28   : > { %v339_v1 = vld [vmem:[#allocation6 + $0xf8] sm:$0xff]  ;;  %340 = vmatpush.msra.mxu0 %v323_v0  ;;  %v338_v3 = vld [vmem:[#allocation6 + $0xf0] sm:$0xff]  ;;  %v321_v4 = vld [vmem:[#allocation6 + $0x68] sm:$0xff]  ;;  %645 = vset.pattern.permute.xlu0 %v828_v35  ;;  %s552_s7 = sshll.u32 %s953_s16, 3  ;;  %s555_s9 = sshll.u32 %s814_s21, 3 }
  0x29   : > { %360 = vmatpush.msra.mxu1 %v339_v1  ;;  %v337_v5 = vld [vmem:[#allocation6 + $0xe8] sm:$0xff]  ;;  %v320_v6 = vld [vmem:[#allocation6 + $0x60] sm:$0xff]  ;;  %v319_v8 = vld [vmem:[#allocation6 + $0x58] sm:$0xff]  ;;  %s432_s12 = scalar_lea.hbm %s1019_s5, %s555_s9  ;;  %s297_s13 = scalar_lea.vmem [#allocation9], %s552_s7 }
  0x2a   : > { %341 = vmatpush.msra.mxu0 %v322_v2  ;;  %v336_v7 = vld [vmem:[#allocation6 + $0xe0] sm:$0xff]  ;;  %v335_v9 = vld [vmem:[#allocation6 + $0xd8] sm:$0xff]  ;;  %v318_v10 = vld [vmem:[#allocation6 + $0x50] sm:$0xff]  ;;  %s434_s15 = sshll.u32 %s297_s13, 4  ;;  %s436_s17 = sshll.u32 %s432_s12, 4  ;;  %s435_s15 = int_to_ptr.vmem [resolvable:$true] %s434_s15  ;;  %s437_s17 = int_to_ptr.hbm [resolvable:$true] %s436_s17 }
  0x2b   : > { %361 = vmatpush.msra.mxu1 %v338_v3  ;;  %v334_v11 = vld [vmem:[#allocation6 + $0xd0] sm:$0xff]  ;;  %v317_v12 = vld [vmem:[#allocation6 + $0x48] sm:$0xff]  ;;  %v316_v14 = vld [vmem:[#allocation6 + $0x40] sm:$0xff]  ;;  %s422_s8 = scalar_lea.sflag [#allocation5], %s953_s16  ;;  %s756_s26 = scalar_lea.hbm %s1019_s5, 16 }
  0x2c   : > { %342 = vmatpush.msra.mxu0 %v321_v4  ;;  %v333_v13 = vld [vmem:[#allocation6 + $0xc8] sm:$0xff]  ;;  %v332_v15 = vld [vmem:[#allocation6 + $0xc0] sm:$0xff]  ;;  %v315_v16 = vld [vmem:[#allocation6 + $0x38] sm:$0xff] }
  0x2d   : > { %362 = vmatpush.msra.mxu1 %v337_v5  ;;  %v331_v17 = vld [vmem:[#allocation6 + $0xb8] sm:$0xff]  ;;  %v314_v18 = vld [vmem:[#allocation6 + $0x30] sm:$0xff]  ;;  %v313_v20 = vld [vmem:[#allocation6 + $0x28] sm:$0xff] }
  0x2e   : > { %343 = vmatpush.msra.mxu0 %v320_v6  ;;  %v330_v19 = vld [vmem:[#allocation6 + $0xb0] sm:$0xff]  ;;  %v329_v21 = vld [vmem:[#allocation6 + $0xa8] sm:$0xff]  ;;  %v312_v22 = vld [vmem:[#allocation6 + $0x20] sm:$0xff] }
  0x2f   : > { %363 = vmatpush.msra.mxu1 %v336_v7  ;;  %v328_v23 = vld [vmem:[#allocation6 + $0xa0] sm:$0xff]  ;;  %v311_v24 = vld [vmem:[#allocation6 + $0x18] sm:$0xff]  ;;  %v310_v26 = vld [vmem:[#allocation6 + $0x10] sm:$0xff] }
  0x30   : > { %344 = vmatpush.msra.mxu0 %v319_v8  ;;  %v327_v25 = vld [vmem:[#allocation6 + $0x98] sm:$0xff]  ;;  %v326_v27 = vld [vmem:[#allocation6 + $0x90] sm:$0xff]  ;;  %v309_v28 = vld [vmem:[#allocation6 + $0x8] sm:$0xff] }
  0x31   : > { %364 = vmatpush.msra.mxu1 %v335_v9  ;;  %v325_v29 = vld [vmem:[#allocation6 + $0x88] sm:$0xff]  ;;  %v308_v30 = vld [vmem:[#allocation6] sm:$0xff] }
  0x32   : > { %345 = vmatpush.msra.mxu0 %v318_v10  ;;  %v324_v31 = vld [vmem:[#allocation6 + $0x80] sm:$0xff]  ;;  %v307_v33 = vld [vmem:[%s957_s24 + $0x8] sm:$0xff] }
  0x33   : > { %365 = vmatpush.msra.mxu1 %v334_v11  ;;  %v306_v32 = vld [vmem:[%s957_s24] sm:$0xff]  ;;  %s750_s24 = sshra.s32 %s437_s17, 4  ;;  %s751_s24 = int_to_ptr.hbm [resolvable:$true] %s750_s24 }
  0x34   : > { %346 = vmatpush.msra.mxu0 %v317_v12  ;;  %v387_v34 = vld [vmem:[%s1017_s3] sm:$0xff]  ;;  %s752_s21 = scalar_lea.hbm %s751_s24, 8  ;;  %p757_p9 = scmp.lt.s32.totalorder %s751_s24, %s1019_s5 }
  0x35   : > { %366 = vmatpush.msra.mxu1 %v333_v13  ;;  %390 = vperm.xlu0 %645, %v387_v34   ;;  %v385_v39 = vld [vmem:[%s1016_s2] sm:$0xff]  ;;  %p753_p1 = scmp.ne.s32.totalorder %s751_s24, %s752_s21  ;;  %p758_p10 = scmp.lt.s32.totalorder %s756_s26, %s752_s21 }
  0x36   : > { %347 = vmatpush.msra.mxu0 %v316_v14  ;;  %v418_v43 = vld [vmem:[#allocation8] sm:$0xff] }
  0x37   : > { %367 = vmatpush.msra.mxu1 %v332_v15  ;;  %p754_p3 = pnand %p753_p1, %p933_p0  ;;  %p759_p12 = por %p758_p10, %p757_p9 }
  0x38   : > { %348 = vmatpush.msra.mxu0 %v315_v16 }
  0x39   : > { %368 = vmatpush.msra.mxu1 %v331_v17  ;;  %p755_p8 = pneg %p754_p3 }
  0x3a   : > { %349 = vmatpush.msra.mxu0 %v314_v18 }
  0x3b   : > { %369 = vmatpush.msra.mxu1 %v330_v19  ;;  %p760_p13 = pnand %p759_p12, %p755_p8 }
  0x3c   : > { %350 = vmatpush.msra.mxu0 %v313_v20 }
  0x3d   : > { %370 = vmatpush.msra.mxu1 %v329_v21 }
  0x3e   : > { %351 = vmatpush.msra.mxu0 %v312_v22 }
  0x3f   : > { %371 = vmatpush.msra.mxu1 %v328_v23 }
  0x40   : > { %352 = vmatpush.msra.mxu0 %v311_v24 }
  0x41   : > { %372 = vmatpush.msra.mxu1 %v327_v25 }
  0x42   : > { %353 = vmatpush.msra.mxu0 %v310_v26 }
  0x43   : > { %373 = vmatpush.msra.mxu1 %v326_v27 }
  0x44   : > { %354 = vmatpush.msra.mxu0 %v309_v28 }
  0x45   : > { %374 = vmatpush.msra.mxu1 %v325_v29 }
  0x46   : > { %355 = vmatpush.msra.mxu0 %v308_v30 }
  0x47   : > { %375 = vmatpush.msra.mxu1 %v324_v31  ;;  %356 = vmatmul.f32.vlgmr.msra.gmra.mxu0 %v306_v32 }
  0x48   : > { %376 = vmatmul.f32.vlgmr.msra.gmra.mxu1 %v307_v33 }
  0xa7   : > { %v391_v40 = vpop.permute.xlu0 %390 }
  0xc4   : > { %v357_v36 = vpop.f32.mrf.mxu0 }
  0xc5   : > { %v377_v37 = vpop.f32.mrf.mxu1 }
  0xc6   : > { %v378_v38 = vadd.f32 %v377_v37, %v357_v36 }
  0xc8   : > { %412 = vmatpush.msra.mxu2 %v378_v38 }
  0xc9   : > { %553 = vmatmul.msk.f32.vlgmr.msra.gmra.mxu2 %vm393_vm0, %v385_v39 }
 0x14c   : > { %v414_v41 = vpop.f32.mrf.mxu2 }
 0x14d   : > { %v415_v42 = vadd.f32 %v414_v41, %v391_v40 }
 0x14f   : > { %v417_v44 = vmax.f32 %v415_v42, 0.0 }
 0x151   : > { %v419_v45 = vmul.f32 %v418_v43, %v417_v44 }
 0x153   : > { %420 = vst [vmem:[%s297_s13] sm:$0xff] %v419_v45 }
 0x154   : > { %763 = shalt.err (!%p760_p13)
}
 0x155   : > { %569 = dma.vmem_to_hbm [thread:$0]  (%p933_p0), %s435_s15, 128, %s437_s17, %s422_s8  }
 0x156 PF: > { %s448_s16 = sand.u32 1, %s802_s18   ;;  %p583_p2 = pnand %p544_p6, %p940_p5 }
 0x157   : > { %s449_s9 = scalar_lea.sflag [#allocation5], %s448_s16 }
 0x158   : > { %p584_p4 = pneg %p583_p2 }
 0x15a   : > { %797 = dma.done.wait (%p584_p4), %s449_s9, 128  }
 0x15b   : > { %799 = vsyncadd (%p584_p4), %s449_s9, 4294967168  ;;  %s22_s23 = sadd.s32 1, %s822_s23   ;;  %s1025_s18 = smov %s806_s19 }
 0x15c   : > { %p19_p7 = scmp.ge.s32.totalorder %s22_s23, 4   ;;  %s1026_s19 = smov %s810_s20 }
 0x15d   : > { %s1027_s20 = smov %s938_s28  ;;  %s1028_s21 = smov %s818_s22 }
 0x15e   : > { %s1029_s22 = smov %s1031_s14  ;;  %21 = sbr.rel (!%p19_p7) target bundleno = 7 (0x7), region = 102 }
 0x163   :  { %455 = vsyncpa [#allocation4], 1 }
 0x164   :  { %457 = vsyncpa [#allocation4 + $0x1], 1 }
 0x165   :  { %458 = vsyncpa [#allocation7], 1 }
 0x166   :  { %459 = vsyncpa [#allocation5], 1 }
 0x167   :  { %461 = vsyncpa [#allocation5 + $0x1], 1 }

</bundles_post_ra>
